<compile_context>
chip_gen: v7x
topology: tpu7x:2x2x1
jax: 0.10.0
libtpu: 0.0.40
codegen_flags: <defaults>
</compile_context>

<pallas_src>
import functools

import jax
import jax.numpy as jnp
from jax.experimental import pallas as pl
from jax.experimental.pallas import tpu as pltpu


def _round_up(x, m):
    return (x + m - 1) // m * m


# ----------------------------- fused single-call kernel (small N) -----------------------------

def _fused_gin_kernel(eps_ref, a_ref, p_ref, x_ref, *refs, num_layers, h_pad):
    """All layers + global add pool in one kernel; everything stays in VMEM.

    eps_ref : (L,)        f32 SMEM   GIN eps per layer
    a_ref   : (Np, Np)    bf16       adjacency (messages src -> dst), shared by all layers
    p_ref   : (Gp, Np)    bf16       one-hot pooling matrix
    x_ref   : (Np, K0p)   bf16       zero-padded node features
    refs    : per-layer (W1, b1, W2, b2) followed by z_ref (Np, L*Hp) f32, g_ref (Gp, L*Hp) f32
    """
    w_refs = refs[:4 * num_layers]
    z_ref, g_ref = refs[4 * num_layers], refs[4 * num_layers + 1]

    a = a_ref[...]
    p = p_ref[...]
    h = x_ref[...]                                    # bf16, lane-dense
    for l in range(num_layers):                       # static unroll
        w1, b1, w2, b2 = w_refs[4 * l:4 * l + 4]
        # neighbor aggregation on the MXU + f32 self-term FMA on the VPU (hides under MXU slot)
        agg = jnp.dot(a, h, preferred_element_type=jnp.float32)
        agg = agg + (1.0 + eps_ref[l]) * h.astype(jnp.float32)
        # MLP: Linear -> ReLU -> Linear -> ReLU (bf16 operands, f32 accumulation)
        t = jnp.dot(agg.astype(jnp.bfloat16), w1[...],
                    preferred_element_type=jnp.float32) + b1[...]
        t = jnp.maximum(t, 0.0)
        t = jnp.dot(t.astype(jnp.bfloat16), w2[...],
                    preferred_element_type=jnp.float32) + b2[...]
        t = jnp.maximum(t, 0.0)                       # f32 (Np, Hp)

        # 128-aligned, unmasked stores of this layer's slice of z and g
        z_ref[:, l * h_pad:(l + 1) * h_pad] = t
        g_ref[:, l * h_pad:(l + 1) * h_pad] = jnp.dot(
            p, t.astype(jnp.bfloat16), preferred_element_type=jnp.float32)

        h = t.astype(jnp.bfloat16)                    # feed next layer (stays in VMEM)


# ----------------------------- tiled per-layer kernel (large N) -------------------------------

def _gin_layer_kernel(eps_ref, a_ref, hk_ref, hs_ref, p_ref, w1_ref, b1_ref, w2_ref, b2_ref,
                      z_ref, gp_ref, acc_ref):
    """One GIN layer, grid = (row_tiles, k_tiles): rows 'parallel', reduction 'arbitrary'.

    a_ref  : (tm, tk) bf16   adjacency tile            hk_ref : (tk, Kp) bf16  h reduction tile
    hs_ref : (tm, Kp) bf16   h self rows               p_ref  : (Gp, tm) bf16  pool columns
    z_ref  : (tm, Hp) f32    layer output rows         gp_ref : (1, Gp, Hp) f32 pooled partial
    acc_ref: (tm, Kp) f32    A@h accumulator (VMEM scratch)
    """
    k = pl.program_id(1)

    @pl.when(k == 0)
    def _():
        acc_ref[...] = jnp.zeros_like(acc_ref)

    acc_ref[...] += jnp.dot(a_ref[...], hk_ref[...], preferred_element_type=jnp.float32)

    @pl.when(k == pl.num_programs(1) - 1)
    def _():
        agg = acc_ref[...] + (1.0 + eps_ref[0]) * hs_ref[...].astype(jnp.float32)
        t = jnp.dot(agg.astype(jnp.bfloat16), w1_ref[...],
                    preferred_element_type=jnp.float32) + b1_ref[...]
        t = jnp.maximum(t, 0.0)
        t = jnp.dot(t.astype(jnp.bfloat16), w2_ref[...],
                    preferred_element_type=jnp.float32) + b2_ref[...]
        t = jnp.maximum(t, 0.0)
        z_ref[...] = t
        gp_ref[0] = jnp.dot(p_ref[...], t.astype(jnp.bfloat16),
                            preferred_element_type=jnp.float32)


# ----------------------------- VMEM sizing helpers ---------------------------------------------

_FUSED_VMEM_BUDGET = 10 * 1024 * 1024   # above this, switch to the tiled/gridded path


def _fused_vmem_bytes(n_pad, g_pad, h_pad, k0_pad, num_layers):
    kmax = max(k0_pad, h_pad)
    by = n_pad * n_pad * 2 + g_pad * n_pad * 2 + n_pad * k0_pad * 2
    by += num_layers * (kmax * h_pad * 2 + h_pad * h_pad * 2 + 2 * h_pad * 4)
    by += (n_pad + g_pad) * num_layers * h_pad * 4      # z, g outputs
    by += 4 * n_pad * kmax * 4                           # live f32 intermediates
    return by


def _tiled_vmem_bytes(tm, tk, kp, h_pad, g_pad):
    by = 2 * tm * tk * 2                                 # A tiles (double buffered)
    by += 2 * tk * kp * 2 + 2 * tm * kp * 2              # h reduction + self tiles
    by += 2 * g_pad * tm * 2                             # P tiles
    by += 2 * (kp * h_pad * 2 + h_pad * h_pad * 2 + 2 * h_pad * 4)   # weights
    by += 2 * tm * h_pad * 4 + 2 * g_pad * h_pad * 4     # z, pooled-partial outputs
    by += tm * kp * 4                                    # accumulator scratch
    return by


def _vmem_limit(estimate):
    # never lower below the default scoped limit; raise (with headroom) when residents are big
    return int(min(max(2 * estimate + (2 << 20), 32 << 20), 100 << 20))


# ----------------------------- parameters ------------------------------------------------------

def init_params(key, in_dim, hidden_dim, num_layers):
    params = []
    dim = in_dim
    for _ in range(num_layers):
        key, k1, k2 = jax.random.split(key, 3)
        params.append(dict(
            w1=(jax.random.normal(k1, (dim, hidden_dim), jnp.float32) * 0.1),
            b1=jnp.zeros((1, hidden_dim), jnp.float32),
            w2=(jax.random.normal(k2, (hidden_dim, hidden_dim), jnp.float32) * 0.1),
            b2=jnp.zeros((1, hidden_dim), jnp.float32),
            eps=jnp.zeros((1,), jnp.float32),          # GINConv eps, default 0
        ))
        dim = hidden_dim
    return params


def _pad_layer_params(params, hidden, h_pad, k0_pad):
    padded = []
    for l, layer in enumerate(params):
        kin = layer["w1"].shape[0]
        kp = k0_pad if l == 0 else h_pad               # per-layer contraction padding
        w1 = jnp.pad(layer["w1"], ((0, kp - kin), (0, h_pad - hidden))).astype(jnp.bfloat16)
        w2 = jnp.pad(layer["w2"], ((0, h_pad - hidden), (0, h_pad - hidden))).astype(jnp.bfloat16)
        b1 = jnp.pad(layer["b1"], ((0, 0), (0, h_pad - hidden)))       # f32
        b2 = jnp.pad(layer["b2"], ((0, 0), (0, h_pad - hidden)))       # f32
        padded.append((w1, b1, w2, b2))
    return padded


# ----------------------------- forward wrappers -------------------------------------------------

def _forward_fused(a, p, x_p, eps, wb, n, num_graphs, n_pad, g_pad, h_pad, k0_pad,
                   hidden, num_layers):
    vmem = pl.BlockSpec(memory_space=pltpu.MemorySpace.VMEM)
    smem = pl.BlockSpec(memory_space=pltpu.MemorySpace.SMEM)
    flat_wb = [t for layer in wb for t in layer]
    kernel = functools.partial(_fused_gin_kernel, num_layers=num_layers, h_pad=h_pad)
    est = _fused_vmem_bytes(n_pad, g_pad, h_pad, k0_pad, num_layers)

    z_pad, g_pool = pl.pallas_call(
        kernel,
        out_shape=(jax.ShapeDtypeStruct((n_pad, num_layers * h_pad), jnp.float32),
                   jax.ShapeDtypeStruct((g_pad, num_layers * h_pad), jnp.float32)),
        in_specs=[smem, vmem, vmem, vmem] + [vmem] * (4 * num_layers),
        out_specs=(vmem, vmem),
        compiler_params=pltpu.CompilerParams(vmem_limit_bytes=_vmem_limit(est)),
    )(eps, a, p, x_p, *flat_wb)

    z = jnp.concatenate(
        [z_pad[:n, l * h_pad:l * h_pad + hidden] for l in range(num_layers)], axis=1)
    g = jnp.concatenate(
        [g_pool[:num_graphs, l * h_pad:l * h_pad + hidden] for l in range(num_layers)], axis=1)
    return z, g


def _forward_tiled(a, p, x_p, eps, wb, n, num_graphs, n_pad, g_pad, h_pad, hidden, num_layers):
    tm = 256                                           # row tile (MXU-friendly on v6e/v7x)
    tk = 512 if n_pad % 512 == 0 else 256              # reduction tile
    n_rt = n_pad // tm
    grid = (n_rt, n_pad // tk)

    h = x_p                                            # bf16 (n_pad, k0_pad)
    zs, gs = [], []
    for l in range(num_layers):
        w1, b1, w2, b2 = wb[l]
        kp = w1.shape[0]
        est = _tiled_vmem_bytes(tm, tk, kp, h_pad, g_pad)

        z_l, gp = pl.pallas_call(
            _gin_layer_kernel,
            out_shape=(jax.ShapeDtypeStruct((n_pad, h_pad), jnp.float32),
                       jax.ShapeDtypeStruct((n_rt, g_pad, h_pad), jnp.float32)),
            grid=grid,
            in_specs=[
                pl.BlockSpec(memory_space=pltpu.MemorySpace.SMEM),        # eps_l (1,) f32
                pl.BlockSpec((tm, tk), lambda i, k: (i, k)),              # A tile
                pl.BlockSpec((tk, kp), lambda i, k: (k, 0)),              # h reduction tile
                pl.BlockSpec((tm, kp), lambda i, k: (i, 0)),              # h self rows
                pl.BlockSpec((g_pad, tm), lambda i, k: (0, i)),           # P columns
                pl.BlockSpec((kp, h_pad), lambda i, k: (0, 0)),           # W1 (resident)
                pl.BlockSpec((1, h_pad), lambda i, k: (0, 0)),            # b1
                pl.BlockSpec((h_pad, h_pad), lambda i, k: (0, 0)),        # W2
                pl.BlockSpec((1, h_pad), lambda i, k: (0, 0)),            # b2
            ],
            out_specs=(
                pl.BlockSpec((tm, h_pad), lambda i, k: (i, 0)),           # z / next-layer h
                pl.BlockSpec((1, g_pad, h_pad), lambda i, k: (i, 0, 0)),  # pooled partials
            ),
            scratch_shapes=[pltpu.VMEM((tm, kp), jnp.float32)],
            compiler_params=pltpu.CompilerParams(
                dimension_semantics=("parallel", "arbitrary"),
                vmem_limit_bytes=_vmem_limit(est)),
        )(eps[l:l + 1], a, h, h, p, w1, b1, w2, b2)

        g_l = gp.sum(axis=0)        # reduce per-row-tile partials outside (keeps row axis parallel)
        zs.append(z_l[:n, :hidden])
        gs.append(g_l[:num_graphs, :hidden])
        if l + 1 < num_layers:
            h = z_l.astype(jnp.bfloat16)
    return jnp.concatenate(zs, axis=1), jnp.concatenate(gs, axis=1)


@functools.partial(jax.jit, static_argnames=("num_graphs", "tiled"))
def encoder_forward(params, x, edge_index, batch, num_graphs, tiled=None):
    """Equivalent of Encoder.forward(x, edge_index, batch) -> (z, g)."""
    n, f_in = x.shape
    num_layers = len(params)
    hidden = params[0]["w2"].shape[1]

    h_pad = _round_up(hidden, 128)
    k0_pad = _round_up(f_in, 128)
    g_pad = _round_up(num_graphs, 16)

    n_pad_fused = _round_up(n, 128)
    if tiled is None:
        tiled = _fused_vmem_bytes(n_pad_fused, g_pad, h_pad, k0_pad,
                                  num_layers) > _FUSED_VMEM_BUDGET
    n_pad = _round_up(n, 256) if tiled else n_pad_fused

    # glue: adjacency (messages src -> dst) built directly at padded shape as a single bf16
    # buffer (edge counts are small integers -> exact in bf16); no eye / stack / extra pad copy.
    src, dst = edge_index[0], edge_index[1]
    a = jnp.zeros((n_pad, n_pad), jnp.bfloat16).at[dst, src].add(1.0)

    # glue: one-hot pooling matrix (Gp, Np) built directly at padded shape (0/1 exact in bf16)
    p = jnp.zeros((g_pad, n_pad), jnp.bfloat16).at[batch, jnp.arange(n)].set(1.0)

    x_p = jnp.pad(x.astype(jnp.float32),
                  ((0, n_pad - n), (0, k0_pad - f_in))).astype(jnp.bfloat16)
    eps = jnp.concatenate([layer["eps"] for layer in params]).astype(jnp.float32)   # (L,)
    wb = _pad_layer_params(params, hidden, h_pad, k0_pad)

    if tiled:
        return _forward_tiled(a, p, x_p, eps, wb, n, num_graphs, n_pad, g_pad,
                              h_pad, hidden, num_layers)
    return _forward_fused(a, p, x_p, eps, wb, n, num_graphs, n_pad, g_pad,
                          h_pad, k0_pad, hidden, num_layers)


# ----------------------------- main -------------------------------------------------------------

if __name__ == "__main__":
    key = jax.random.PRNGKey(0)

    # Small case -> fused single-call path.
    N, F_IN, HIDDEN, NUM_LAYERS, NUM_GRAPHS, NUM_EDGES = 16, 8, 32, 2, 2, 32
    key, kx, ke, kparam = jax.random.split(key, 4)
    x = jax.random.normal(kx, (N, F_IN), jnp.float32)
    edge_index = jax.random.randint(ke, (2, NUM_EDGES), 0, N, dtype=jnp.int32)
    batch = jnp.concatenate([jnp.zeros(N // 2, jnp.int32), jnp.ones(N - N // 2, jnp.int32)])
    params = init_params(kparam, F_IN, HIDDEN, NUM_LAYERS)

    z, g = encoder_forward(params, x, edge_index, batch, num_graphs=NUM_GRAPHS)
    jax.block_until_ready((z, g))
    assert z.shape == (N, HIDDEN * NUM_LAYERS)
    assert g.shape == (NUM_GRAPHS, HIDDEN * NUM_LAYERS)
    assert bool(jnp.all(jnp.isfinite(z))) and bool(jnp.all(jnp.isfinite(g)))

    # Medium case forced through the tiled/gridded path (rows parallel, reduction arbitrary).
    N2, F2, H2, G2, E2 = 600, 8, 64, 5, 2400
    key, kx2, ke2, kp2 = jax.random.split(key, 4)
    x2 = jax.random.normal(kx2, (N2, F2), jnp.float32)
    edge_index2 = jax.random.randint(ke2, (2, E2), 0, N2, dtype=jnp.int32)
    batch2 = jnp.sort(jax.random.randint(key, (N2,), 0, G2, dtype=jnp.int32))
    params2 = init_params(kp2, F2, H2, NUM_LAYERS)

    z2, g2 = encoder_forward(params2, x2, edge_index2, batch2, num_graphs=G2, tiled=True)
    jax.block_until_ready((z2, g2))
    assert z2.shape == (N2, H2 * NUM_LAYERS)
    assert g2.shape == (G2, H2 * NUM_LAYERS)
    assert bool(jnp.all(jnp.isfinite(z2))) and bool(jnp.all(jnp.isfinite(g2)))

    print("KERNEL_OK")
</pallas_src>

<mosaic_0001>
module attributes {stable_mosaic.version = 11 : i64} {
  func.func @_fused_gin_kernel(%arg0: memref<2xf32, #tpu.memory_space<smem>>, %arg1: memref<128x128xbf16, #tpu.memory_space<vmem>>, %arg2: memref<16x128xbf16, #tpu.memory_space<vmem>>, %arg3: memref<128x128xbf16, #tpu.memory_space<vmem>>, %arg4: memref<128x128xbf16, #tpu.memory_space<vmem>>, %arg5: memref<1x128xf32, #tpu.memory_space<vmem>>, %arg6: memref<128x128xbf16, #tpu.memory_space<vmem>>, %arg7: memref<1x128xf32, #tpu.memory_space<vmem>>, %arg8: memref<128x128xbf16, #tpu.memory_space<vmem>>, %arg9: memref<1x128xf32, #tpu.memory_space<vmem>>, %arg10: memref<128x128xbf16, #tpu.memory_space<vmem>>, %arg11: memref<1x128xf32, #tpu.memory_space<vmem>>, %arg12: memref<128x256xf32, #tpu.memory_space<vmem>>, %arg13: memref<16x256xf32, #tpu.memory_space<vmem>>) attributes {dimension_semantics = [], scalar_prefetch = 0 : i64, scratch_operands = 0 : i64, tpu.core_type = #tpu.core_type<tc>} {
    %c0 = arith.constant 0 : index
    %c0_0 = arith.constant 0 : index
    %0 = vector.load %arg1[%c0, %c0_0] : memref<128x128xbf16, #tpu.memory_space<vmem>>, vector<128x128xbf16>
    %c0_1 = arith.constant 0 : index
    %c0_2 = arith.constant 0 : index
    %1 = vector.load %arg2[%c0_1, %c0_2] : memref<16x128xbf16, #tpu.memory_space<vmem>>, vector<16x128xbf16>
    %c0_3 = arith.constant 0 : index
    %c0_4 = arith.constant 0 : index
    %2 = vector.load %arg3[%c0_3, %c0_4] : memref<128x128xbf16, #tpu.memory_space<vmem>>, vector<128x128xbf16>
    %cst = arith.constant dense<0.000000e+00> : vector<128x128xf32>
    %3 = tpu.matmul %0, %2, %cst {dimension_numbers = #tpu.dot_dimension_numbers<[1], [0], [0], [1], [0, 0, 1, 1], [], []>} : vector<128x128xbf16>, vector<128x128xbf16>, vector<128x128xf32> -> vector<128x128xf32>
    %c0_5 = arith.constant 0 : index
    %4 = memref.load %arg0[%c0_5] : memref<2xf32, #tpu.memory_space<smem>>
    %cst_6 = arith.constant 1.000000e+00 : f32
    %5 = arith.addf %cst_6, %4 : f32
    %6 = arith.extf %2 : vector<128x128xbf16> to vector<128x128xf32>
    %7 = vector.broadcast %5 : f32 to vector<128x128xf32>
    %8 = arith.mulf %7, %6 : vector<128x128xf32>
    %9 = arith.addf %3, %8 : vector<128x128xf32>
    %10 = arith.truncf %9 : vector<128x128xf32> to vector<128x128xbf16>
    %c0_7 = arith.constant 0 : index
    %c0_8 = arith.constant 0 : index
    %11 = vector.load %arg4[%c0_7, %c0_8] : memref<128x128xbf16, #tpu.memory_space<vmem>>, vector<128x128xbf16>
    %cst_9 = arith.constant dense<0.000000e+00> : vector<128x128xf32>
    %12 = tpu.matmul %10, %11, %cst_9 {dimension_numbers = #tpu.dot_dimension_numbers<[1], [0], [0], [1], [0, 0, 1, 1], [], []>} : vector<128x128xbf16>, vector<128x128xbf16>, vector<128x128xf32> -> vector<128x128xf32>
    %c0_10 = arith.constant 0 : index
    %c0_11 = arith.constant 0 : index
    %13 = vector.load %arg5[%c0_10, %c0_11] : memref<1x128xf32, #tpu.memory_space<vmem>>, vector<1x128xf32>
    %14 = vector.broadcast %13 : vector<1x128xf32> to vector<128x128xf32>
    %15 = arith.addf %12, %14 : vector<128x128xf32>
    %cst_12 = arith.constant 0.000000e+00 : f32
    %16 = vector.broadcast %cst_12 : f32 to vector<128x128xf32>
    %17 = arith.maximumf %15, %16 : vector<128x128xf32>
    %18 = arith.truncf %17 : vector<128x128xf32> to vector<128x128xbf16>
    %c0_13 = arith.constant 0 : index
    %c0_14 = arith.constant 0 : index
    %19 = vector.load %arg6[%c0_13, %c0_14] : memref<128x128xbf16, #tpu.memory_space<vmem>>, vector<128x128xbf16>
    %cst_15 = arith.constant dense<0.000000e+00> : vector<128x128xf32>
    %20 = tpu.matmul %18, %19, %cst_15 {dimension_numbers = #tpu.dot_dimension_numbers<[1], [0], [0], [1], [0, 0, 1, 1], [], []>} : vector<128x128xbf16>, vector<128x128xbf16>, vector<128x128xf32> -> vector<128x128xf32>
    %c0_16 = arith.constant 0 : index
    %c0_17 = arith.constant 0 : index
    %21 = vector.load %arg7[%c0_16, %c0_17] : memref<1x128xf32, #tpu.memory_space<vmem>>, vector<1x128xf32>
    %22 = vector.broadcast %21 : vector<1x128xf32> to vector<128x128xf32>
    %23 = arith.addf %20, %22 : vector<128x128xf32>
    %cst_18 = arith.constant 0.000000e+00 : f32
    %24 = vector.broadcast %cst_18 : f32 to vector<128x128xf32>
    %25 = arith.maximumf %23, %24 : vector<128x128xf32>
    %c0_19 = arith.constant 0 : index
    %c0_20 = arith.constant 0 : index
    %26 = vector.load %arg12[%c0_19, %c0_20] : memref<128x256xf32, #tpu.memory_space<vmem>>, vector<128x128xf32>
    tpu.vector_store %arg12[%c0_19, %c0_20], %25 {strides = array<i32>} : memref<128x256xf32, #tpu.memory_space<vmem>>, vector<128x128xf32>,
    %27 = arith.truncf %25 : vector<128x128xf32> to vector<128x128xbf16>
    %cst_21 = arith.constant dense<0.000000e+00> : vector<16x128xf32>
    %28 = tpu.matmul %1, %27, %cst_21 {dimension_numbers = #tpu.dot_dimension_numbers<[1], [0], [0], [1], [0, 0, 1, 1], [], []>} : vector<16x128xbf16>, vector<128x128xbf16>, vector<16x128xf32> -> vector<16x128xf32>
    %c0_22 = arith.constant 0 : index
    %c0_23 = arith.constant 0 : index
    %29 = vector.load %arg13[%c0_22, %c0_23] : memref<16x256xf32, #tpu.memory_space<vmem>>, vector<16x128xf32>
    tpu.vector_store %arg13[%c0_22, %c0_23], %28 {strides = array<i32>} : memref<16x256xf32, #tpu.memory_space<vmem>>, vector<16x128xf32>,
    %30 = arith.truncf %25 : vector<128x128xf32> to vector<128x128xbf16>
    %cst_24 = arith.constant dense<0.000000e+00> : vector<128x128xf32>
    %31 = tpu.matmul %0, %30, %cst_24 {dimension_numbers = #tpu.dot_dimension_numbers<[1], [0], [0], [1], [0, 0, 1, 1], [], []>} : vector<128x128xbf16>, vector<128x128xbf16>, vector<128x128xf32> -> vector<128x128xf32>
    %c1 = arith.constant 1 : index
    %32 = memref.load %arg0[%c1] : memref<2xf32, #tpu.memory_space<smem>>
    %cst_25 = arith.constant 1.000000e+00 : f32
    %33 = arith.addf %cst_25, %32 : f32
    %34 = arith.extf %30 : vector<128x128xbf16> to vector<128x128xf32>
    %35 = vector.broadcast %33 : f32 to vector<128x128xf32>
    %36 = arith.mulf %35, %34 : vector<128x128xf32>
    %37 = arith.addf %31, %36 : vector<128x128xf32>
    %38 = arith.truncf %37 : vector<128x128xf32> to vector<128x128xbf16>
    %c0_26 = arith.constant 0 : index
    %c0_27 = arith.constant 0 : index
    %39 = vector.load %arg8[%c0_26, %c0_27] : memref<128x128xbf16, #tpu.memory_space<vmem>>, vector<128x128xbf16>
    %cst_28 = arith.constant dense<0.000000e+00> : vector<128x128xf32>
    %40 = tpu.matmul %38, %39, %cst_28 {dimension_numbers = #tpu.dot_dimension_numbers<[1], [0], [0], [1], [0, 0, 1, 1], [], []>} : vector<128x128xbf16>, vector<128x128xbf16>, vector<128x128xf32> -> vector<128x128xf32>
    %c0_29 = arith.constant 0 : index
    %c0_30 = arith.constant 0 : index
    %41 = vector.load %arg9[%c0_29, %c0_30] : memref<1x128xf32, #tpu.memory_space<vmem>>, vector<1x128xf32>
    %42 = vector.broadcast %41 : vector<1x128xf32> to vector<128x128xf32>
    %43 = arith.addf %40, %42 : vector<128x128xf32>
    %cst_31 = arith.constant 0.000000e+00 : f32
    %44 = vector.broadcast %cst_31 : f32 to vector<128x128xf32>
    %45 = arith.maximumf %43, %44 : vector<128x128xf32>
    %46 = arith.truncf %45 : vector<128x128xf32> to vector<128x128xbf16>
    %c0_32 = arith.constant 0 : index
    %c0_33 = arith.constant 0 : index
    %47 = vector.load %arg10[%c0_32, %c0_33] : memref<128x128xbf16, #tpu.memory_space<vmem>>, vector<128x128xbf16>
    %cst_34 = arith.constant dense<0.000000e+00> : vector<128x128xf32>
    %48 = tpu.matmul %46, %47, %cst_34 {dimension_numbers = #tpu.dot_dimension_numbers<[1], [0], [0], [1], [0, 0, 1, 1], [], []>} : vector<128x128xbf16>, vector<128x128xbf16>, vector<128x128xf32> -> vector<128x128xf32>
    %c0_35 = arith.constant 0 : index
    %c0_36 = arith.constant 0 : index
    %49 = vector.load %arg11[%c0_35, %c0_36] : memref<1x128xf32, #tpu.memory_space<vmem>>, vector<1x128xf32>
    %50 = vector.broadcast %49 : vector<1x128xf32> to vector<128x128xf32>
    %51 = arith.addf %48, %50 : vector<128x128xf32>
    %cst_37 = arith.constant 0.000000e+00 : f32
    %52 = vector.broadcast %cst_37 : f32 to vector<128x128xf32>
    %53 = arith.maximumf %51, %52 : vector<128x128xf32>
    %c0_38 = arith.constant 0 : index
    %c128 = arith.constant 128 : index
    %54 = vector.load %arg12[%c0_38, %c128] : memref<128x256xf32, #tpu.memory_space<vmem>>, vector<128x128xf32>
    tpu.vector_store %arg12[%c0_38, %c128], %53 {strides = array<i32>} : memref<128x256xf32, #tpu.memory_space<vmem>>, vector<128x128xf32>,
    %55 = arith.truncf %53 : vector<128x128xf32> to vector<128x128xbf16>
    %cst_39 = arith.constant dense<0.000000e+00> : vector<16x128xf32>
    %56 = tpu.matmul %1, %55, %cst_39 {dimension_numbers = #tpu.dot_dimension_numbers<[1], [0], [0], [1], [0, 0, 1, 1], [], []>} : vector<16x128xbf16>, vector<128x128xbf16>, vector<16x128xf32> -> vector<16x128xf32>
    %c0_40 = arith.constant 0 : index
    %c128_41 = arith.constant 128 : index
    %57 = vector.load %arg13[%c0_40, %c128_41] : memref<16x256xf32, #tpu.memory_space<vmem>>, vector<16x128xf32>
    tpu.vector_store %arg13[%c0_40, %c128_41], %56 {strides = array<i32>} : memref<16x256xf32, #tpu.memory_space<vmem>>, vector<16x128xf32>,
    return
  }
}

</mosaic_0001>

<bundles_post_ra>
// kernel: encoder_forward.1
= control target key start
LH: loop header
LB: loop body
LE: loop exit
PB: predicated region body
PF: predicated region fallthrough
CT: control target
= control target key end

     0   :  { %19 = vsyncpa [#allocation3], 0  ;;  %s2417_s0 = inlined_call_operand.vmem [shape: f32[2], index: 0, kind: input, shape index: {}]   ;;  %s2418_s1 = inlined_call_operand.vmem [shape: bf16[128,128], index: 1, kind: input, shape index: {}]   ;;  %s2419_s2 = inlined_call_operand.vmem [shape: bf16[16,128], index: 2, kind: input, shape index: {}]   ;;  %s2420_s3 = inlined_call_operand.vmem [shape: bf16[128,128], index: 3, kind: input, shape index: {}]   ;;  %s2421_s4 = inlined_call_operand.vmem [shape: bf16[128,128], index: 4, kind: input, shape index: {}]   ;;  %s2422_s5 = inlined_call_operand.vmem [shape: f32[1,128], index: 5, kind: input, shape index: {}]   ;;  %s2423_s6 = inlined_call_operand.vmem [shape: bf16[128,128], index: 6, kind: input, shape index: {}]   ;;  %s2424_s7 = inlined_call_operand.vmem [shape: f32[1,128], index: 7, kind: input, shape index: {}]   ;;  %s2425_s8 = inlined_call_operand.vmem [shape: bf16[128,128], index: 8, kind: input, shape index: {}]   ;;  %s2426_s9 = inlined_call_operand.vmem [shape: f32[1,128], index: 9, kind: input, shape index: {}]   ;;  %s2427_s10 = inlined_call_operand.vmem [shape: bf16[128,128], index: 10, kind: input, shape index: {}]   ;;  %s2428_s11 = inlined_call_operand.vmem [shape: f32[1,128], index: 11, kind: input, shape index: {}]   ;;  %s2429_s12 = inlined_call_operand.vmem [shape: f32[128,256], index: 12, kind: output, shape index: {0}]   ;;  %s2430_s13 = inlined_call_operand.vmem [shape: f32[16,256], index: 13, kind: output, shape index: {1}]  }
   0x1   :  { %s26_s27 = sshll.u32 %s2417_s0, 4  ;;  %s27_s27 = int_to_ptr.vmem [resolvable:$true] %s26_s27 }
   0x2   :  { %s1828_s28 = scalar_lea.vmem %s27_s27, 16  ;;  %p1833_p1 = scmp.lt.s32.totalorder %s27_s27, %s27_s27 }
   0x3   :  { %p1829_p0 = scmp.ne.s32.totalorder %s27_s27, %s1828_s28  ;;  %p1834_p2 = scmp.lt.s32.totalorder %s1828_s28, %s1828_s28 }
   0x5   :  { %p1835_p3 = por %p1834_p2, %p1833_p1 }
   0x7   :  { %p1836_p4 = pnand %p1835_p3, %p1829_p0 }
   0x9   :  { %1839 = shalt.err (!%p1836_p4)
}
   0xa   :  { %s1842_s29 = smov [#allocation2]  }
   0xb   :  { %29 = dma.vmem_to_smem %s27_s27, 16, %s1842_s29, [#allocation3]  }
   0xc   :  { %1840 = dma.done.wait [#allocation3], 16  }
   0xd   :  { %1841 = vsyncadd [#allocation3], 4294967280 }
   0xe   :  { %55 = sfence }
   0xf   :  { %v1921_v0 = vld [vmem:[%s2420_s3] sm:$0xff]   ;;  %v1926_v1 = vld [vmem:[%s2420_s3 + $0x8] sm:$0xff]   ;;  %v1931_v2 = vld [vmem:[%s2420_s3 + $0x10] sm:$0xff]   ;;  %s91_s15 = sld [smem:[#allocation2]]  ;;  %vm1844_vm0 = vmmov 0   ;;  %s1403_s30 = sld [smem:[#allocation2 + $0x1]] }
  0x10   :  { %1536 = vmatprep.subr.bf16.mxu0 %v1921_v0  ;;  %v1937_v3 = vld [vmem:[%s2418_s1] sm:$0xff]   ;;  %v1945_v4 = vld [vmem:[%s2420_s3 + $0x18] sm:$0xff]   ;;  %v1788_v7 = vld [vmem:[%s2421_s4 + $0x8] sm:$0xff]   ;;  %v93_v30 = vunpack.c.l.bf16 %v1921_v0  ;;  %v95_v31 = vunpack.c.l.bf16 %v1926_v1  ;;  %v96_v33 = vunpack.c.h.bf16 %v1926_v1  ;;  %v94_v34 = vunpack.c.h.bf16 %v1921_v0 }
  0x11   :  { %1537 = vmatpush3.bf16.msra.mxu0 %v1921_v0  ;;  %1552 = vmatprep.mubr.bf16.mxu0 %v1937_v3  ;;  %v1952_v5 = vld [vmem:[%s2420_s3 + $0x20] sm:$0xff]   ;;  %v1965_v8 = vld [vmem:[%s2420_s3 + $0x28] sm:$0xff]   ;;  %v1789_v9 = vld [vmem:[%s2421_s4 + $0x10] sm:$0xff]   ;;  %v99_v46 = vunpack.c.l.bf16 %v1945_v4  ;;  %v100_v47 = vunpack.c.h.bf16 %v1945_v4  ;;  %v97_v49 = vunpack.c.l.bf16 %v1931_v2  ;;  %v98_v50 = vunpack.c.h.bf16 %v1931_v2 }
  0x12   :  { %1538 = vmatprep.subr.bf16.mxu0 %v1926_v1  ;;  %v1787_v6 = vld [vmem:[%s2421_s4] sm:$0xff]   ;;  %v1974_v10 = vld [vmem:[%s2420_s3 + $0x30] sm:$0xff]   ;;  %v1790_v11 = vld [vmem:[%s2421_s4 + $0x18] sm:$0xff]   ;;  %v103_v63 = vunpack.c.l.bf16 %v1965_v8  ;;  %v104_v0 = vunpack.c.h.bf16 %v1965_v8 }
  0x13   :  { %1568 = vmatprep.subr.bf16.mxu1 %v1787_v6  ;;  %v1984_v12 = vld [vmem:[%s2420_s3 + $0x38] sm:$0xff]   ;;  %v1791_v13 = vld [vmem:[%s2421_s4 + $0x20] sm:$0xff]   ;;  %v1792_v14 = vld [vmem:[%s2421_s4 + $0x28] sm:$0xff]  }
  0x14   :  { %1569 = vmatpush3.bf16.msra.mxu1 %v1787_v6  ;;  %v2000_v15 = vld [vmem:[%s2418_s1 + $0x8] sm:$0xff]   ;;  %v2005_v16 = vld [vmem:[%s2418_s1 + $0x10] sm:$0xff]   ;;  %v2013_v17 = vld [vmem:[%s2418_s1 + $0x18] sm:$0xff]   ;;  %v102_v6 = vunpack.c.h.bf16 %v1952_v5 }
  0x15   :  { %1539 = vmatpush3.bf16.msra.mxu0 %v1926_v1  ;;  %1570 = vmatprep.subr.bf16.mxu1 %v1788_v7  ;;  %v2018_v18 = vld [vmem:[%s2418_s1 + $0x20] sm:$0xff]   ;;  %v2025_v19 = vld [vmem:[%s2418_s1 + $0x28] sm:$0xff]   ;;  %v2030_v20 = vld [vmem:[%s2418_s1 + $0x30] sm:$0xff]   ;;  %s92_s0 = sadd.f32 1.0, %s91_s15 }
  0x16   :  { %1540 = vmatprep.subr.bf16.mxu0 %v1931_v2  ;;  %v2037_v21 = vld [vmem:[%s2418_s1 + $0x38] sm:$0xff]   ;;  %v1793_v22 = vld [vmem:[%s2421_s4 + $0x30] sm:$0xff]   ;;  %v1795_v24 = vld [vmem:[%s2423_s6] sm:$0xff]   ;;  %s777_s14 = sadd.f32 1.0, %s1403_s30 }
  0x17   :  { %v1794_v23 = vld [vmem:[%s2421_s4 + $0x38] sm:$0xff]   ;;  %v1796_v25 = vld [vmem:[%s2423_s6 + $0x8] sm:$0xff]   ;;  %v1797_v26 = vld [vmem:[%s2423_s6 + $0x10] sm:$0xff]   ;;  %v2066_v32 = vstv %s92_s0 }
  0x18   :  { %1571 = vmatpush3.bf16.msra.mxu1 %v1788_v7  ;;  %v1798_v27 = vld [vmem:[%s2423_s6 + $0x18] sm:$0xff]   ;;  %v1799_v28 = vld [vmem:[%s2423_s6 + $0x20] sm:$0xff]   ;;  %v1800_v29 = vld [vmem:[%s2423_s6 + $0x28] sm:$0xff]   ;;  %v110_v35 = vmul.f32 %v2066_v32, %v93_v30  ;;  %v112_v36 = vmul.f32 %v2066_v32, %v95_v31  ;;  %v113_v37 = vmul.f32 %v2066_v32, %v96_v33  ;;  %v111_v39 = vmul.f32 %v2066_v32, %v94_v34 }
  0x19   :  { %1541 = vmatpush3.bf16.msra.mxu0 %v1931_v2  ;;  %1572 = vmatprep.subr.bf16.mxu1 %v1789_v9  ;;  %v116_v53 = vmul.f32 %v2066_v32, %v99_v46  ;;  %v117_v54 = vmul.f32 %v2066_v32, %v100_v47  ;;  %v114_v56 = vmul.f32 %v2066_v32, %v97_v49  ;;  %v105_v31 = vunpack.c.l.bf16 %v1974_v10  ;;  %v1384_v49 = vld [vmem:[%s2422_s5] ss:$0 sm:$0xff] }
  0x1a   :  { %1542 = vmatprep.subr.bf16.mxu0 %v1945_v4  ;;  %v115_v57 = vmul.f32 %v2066_v32, %v98_v50  ;;  %v106_v33 = vunpack.c.h.bf16 %v1974_v10 }
  0x1c   :  { %1573 = vmatpush3.bf16.msra.mxu1 %v1789_v9 }
  0x1d   :  { %1543 = vmatpush3.bf16.msra.mxu0 %v1945_v4  ;;  %1574 = vmatprep.subr.bf16.mxu1 %v1790_v11  ;;  %v101_v4 = vunpack.c.l.bf16 %v1952_v5 }
  0x1e   :  { %1544 = vmatprep.subr.bf16.mxu0 %v1952_v5 }
  0x20   :  { %1575 = vmatpush3.bf16.msra.mxu1 %v1790_v11  ;;  %v120_v11 = vmul.f32 %v2066_v32, %v103_v63 }
  0x21   :  { %1545 = vmatpush3.bf16.msra.mxu0 %v1952_v5  ;;  %1576 = vmatprep.subr.bf16.mxu1 %v1791_v13  ;;  %v107_v5 = vunpack.c.l.bf16 %v1984_v12 }
  0x22   :  { %1546 = vmatprep.subr.bf16.mxu0 %v1965_v8 }
  0x24   :  { %1577 = vmatpush3.bf16.msra.mxu1 %v1791_v13  ;;  %v121_v13 = vmul.f32 %v2066_v32, %v104_v0 }
  0x25   :  { %1547 = vmatpush3.bf16.msra.mxu0 %v1965_v8  ;;  %1578 = vmatprep.subr.bf16.mxu1 %v1792_v14 }
  0x26   :  { %1548 = vmatprep.subr.bf16.mxu0 %v1974_v10 }
  0x28   :  { %1579 = vmatpush3.bf16.msra.mxu1 %v1792_v14 }
  0x29   :  { %1549 = vmatpush3.bf16.msra.mxu0 %v1974_v10  ;;  %1580 = vmatprep.subr.bf16.mxu1 %v1793_v22 }
  0x2a   :  { %1550 = vmatprep.subr.bf16.mxu0 %v1984_v12 }
  0x2c   :  { %1581 = vmatpush3.bf16.msra.mxu1 %v1793_v22  ;;  %v118_v22 = vmul.f32 %v2066_v32, %v101_v4 }
  0x2d   :  { %1551 = vmatpush3.bf16.msra.mxu0 %v1984_v12  ;;  %1582 = vmatprep.subr.bf16.mxu1 %v1794_v23 }
  0x2e   :  { %1600 = vmatprep.subr.bf16.mxu0 %v1795_v24 }
  0x30   :  { %1553 = vmatmul.mubr.bf16.vlgmr.msra.gmra.mrb[0].mxu0 %v2000_v15  ;;  %1583 = vmatpush3.bf16.msra.mxu1 %v1794_v23  ;;  %v119_v23 = vmul.f32 %v2066_v32, %v102_v6 }
  0x31   :  { %1556 = vmatprep.mubr.bf16.mxu0 %v2005_v16  ;;  %1601 = vmatpush3.bf16.msra.mxu0 %v1795_v24 }
  0x32   :  { %1602 = vmatprep.subr.bf16.mxu0 %v1796_v25 }
  0x35   :  { %1603 = vmatpush3.bf16.msra.mxu0 %v1796_v25 }
  0x36   :  { %1604 = vmatprep.subr.bf16.mxu0 %v1797_v26 }
  0x38   :  { %1557 = vmatmul.mubr.bf16.gmra.mrb[4].mxu0 %v2013_v17 }
  0x39   :  { %1560 = vmatprep.mubr.bf16.mxu0 %v2018_v18  ;;  %1605 = vmatpush3.bf16.msra.mxu0 %v1797_v26 }
  0x3a   :  { %1606 = vmatprep.subr.bf16.mxu0 %v1798_v27 }
  0x3d   :  { %1607 = vmatpush3.bf16.msra.mxu0 %v1798_v27 }
  0x3e   :  { %1608 = vmatprep.subr.bf16.mxu0 %v1799_v28 }
  0x40   :  { %1561 = vmatmul.mubr.bf16.gmra.mrb[8].mxu0 %v2025_v19 }
  0x41   :  { %1564 = vmatprep.mubr.bf16.mxu0 %v2030_v20  ;;  %1609 = vmatpush3.bf16.msra.mxu0 %v1799_v28  ;;  %v108_v28 = vunpack.c.h.bf16 %v1984_v12 }
  0x42   :  { %1610 = vmatprep.subr.bf16.mxu0 %v1800_v29 }
  0x45   :  { %1611 = vmatpush3.bf16.msra.mxu0 %v1800_v29 }
  0x48   :  { %1565 = vmatmul.mubr.bf16.gmra.mrb[12].mxu0 %v2037_v21 }
 0x103   :  { %v1554_v38 = vpop.f32.mrb[0].mxu0 }
 0x104   :  { %v256_v40 = vpop.f32.mrb[1].mxu0  ;;  %v265_v43 = vadd.f32 %v1554_v38, %v112_v36  ;;  %v124_v36 = vmul.f32 %v2066_v32, %v107_v5 }
 0x105   :  { %v257_v41 = vadd.f32 %v256_v40, %v110_v35  ;;  %v1555_v42 = vpop.f32.mrb[2].mxu0  ;;  %v123_v40 = vmul.f32 %v2066_v32, %v106_v33 }
 0x106   :  { %v268_v44 = vadd.f32 %v1555_v42, %v113_v37  ;;  %v259_v45 = vpop.f32.mrb[3].mxu0  ;;  %v125_v37 = vmul.f32 %v2066_v32, %v108_v28 }
 0x107   :  { %v260_v48 = vadd.f32 %v259_v45, %v111_v39  ;;  %v122_v39 = vmul.f32 %v2066_v32, %v105_v31  ;;  %v1802_v32 = vld [vmem:[%s2423_s6 + $0x38] sm:$0xff]  }
 0x108   :  { %v320_v51 = vpack.c.bf16 %v268_v44, %v265_v43 }
 0x109   :  { %v319_v52 = vpack.c.bf16 %v260_v48, %v257_v41  ;;  %v1801_v48 = vld [vmem:[%s2423_s6 + $0x30] sm:$0xff]  }
 0x10a   :  { %1612 = vmatprep.subr.bf16.mxu0 %v1801_v48 }
 0x10b   :  { %v1558_v55 = vpop.f32.mrb[4].mxu0  ;;  %1584 = vmatprep.mubr.bf16.mxu1 %v319_v52  ;;  %1613 = vmatpush3.bf16.msra.mxu0 %v1801_v48 }
 0x10c   :  { %v272_v58 = vpop.f32.mrb[5].mxu0  ;;  %1585 = vmatmul.mubr.bf16.vlgmr.msra.gmra.mrb[0].mxu1 %v320_v51  ;;  %v281_v60 = vadd.f32 %v1558_v55, %v116_v53  ;;  %1614 = vmatprep.subr.bf16.mxu0 %v1802_v32 }
 0x10d   :  { %v1559_v59 = vpop.f32.mrb[6].mxu0  ;;  %v273_v1 = vadd.f32 %v272_v58, %v114_v56 }
 0x10e   :  { %v284_v61 = vadd.f32 %v1559_v59, %v117_v54  ;;  %v275_v62 = vpop.f32.mrb[7].mxu0 }
 0x10f   :  { %v276_v2 = vadd.f32 %v275_v62, %v115_v57  ;;  %1615 = vmatpush3.bf16.msra.mxu0 %v1802_v32 }
 0x110   :  { %v322_v7 = vpack.c.bf16 %v284_v61, %v281_v60 }
 0x111   :  { %v321_v9 = vpack.c.bf16 %v276_v2, %v273_v1 }
 0x113   :  { %v1562_v14 = vpop.f32.mrb[8].mxu0  ;;  %1588 = vmatprep.mubr.bf16.mxu1 %v321_v9 }
 0x114   :  { %v288_v24 = vpop.f32.mrb[9].mxu0  ;;  %1589 = vmatmul.mubr.bf16.gmra.mrb[4].mxu1 %v322_v7  ;;  %v297_v25 = vadd.f32 %v1562_v14, %v120_v11 }
 0x115   :  { %v1563_v8 = vpop.f32.mrb[10].mxu0  ;;  %v289_v29 = vadd.f32 %v288_v24, %v118_v22 }
 0x116   :  { %v300_v26 = vadd.f32 %v1563_v8, %v121_v13  ;;  %v291_v27 = vpop.f32.mrb[11].mxu0 }
 0x117   :  { %v292_v30 = vadd.f32 %v291_v27, %v119_v23 }
 0x118   :  { %v324_v34 = vpack.c.bf16 %v300_v26, %v297_v25 }
 0x119   :  { %v323_v35 = vpack.c.bf16 %v292_v30, %v289_v29 }
 0x11b   :  { %v1566_v38 = vpop.f32.mrb[12].mxu0  ;;  %1592 = vmatprep.mubr.bf16.mxu1 %v323_v35 }
 0x11c   :  { %v304_v41 = vpop.f32.mrb[13].mxu0  ;;  %1593 = vmatmul.mubr.bf16.gmra.mrb[8].mxu1 %v324_v34  ;;  %v313_v42 = vadd.f32 %v1566_v38, %v124_v36 }
 0x11d   :  { %v1567_v12 = vpop.f32.mrb[14].mxu0  ;;  %v305_v45 = vadd.f32 %v304_v41, %v122_v39 }
 0x11e   :  { %v316_v43 = vadd.f32 %v1567_v12, %v125_v37  ;;  %v307_v44 = vpop.f32.mrb[15].mxu0 }
 0x11f   :  { %v308_v10 = vadd.f32 %v307_v44, %v123_v40 }
 0x120   :  { %v326_v46 = vpack.c.bf16 %v316_v43, %v313_v42 }
 0x121   :  { %v325_v47 = vpack.c.bf16 %v308_v10, %v305_v45 }
 0x123   :  { %1596 = vmatprep.mubr.bf16.mxu1 %v325_v47 }
 0x124   :  { %1597 = vmatmul.mubr.bf16.gmra.mrb[12].mxu1 %v326_v46 }
 0x1df   :  { %v1586_v50 = vpop.f32.mrb[0].mxu1 }
 0x1e0   :  { %v441_v51 = vadd.f32 %v1586_v50, %v1384_v49  ;;  %v432_v52 = vpop.f32.mrb[1].mxu1 }
 0x1e1   :  { %v433_v53 = vadd.f32 %v1384_v49, %v432_v52  ;;  %v1587_v54 = vpop.f32.mrb[2].mxu1 }
 0x1e2   :  { %v444_v55 = vadd.f32 %v1587_v54, %v1384_v49  ;;  %v435_v56 = vpop.f32.mrb[3].mxu1  ;;  %v497_v58 = vmax.f32 %v441_v51, 0.0  ;;  %v1843_v51 = vmov 0.0  }
 0x1e3   :  { %v436_v57 = vadd.f32 %v1384_v49, %v435_v56  ;;  %v495_v60 = vmax.f32 %v433_v53, 0.0  ;;  %1632 = vmatprep.subr.bf16.mxu1 %v1843_v51  ;;  %1648 = vmatprep.mubr.msk.bf16.mxu1 %vm1844_vm0, %v1843_v51 }
 0x1e4   :  { %v498_v59 = vmax.f32 %v444_v55, 0.0 }
 0x1e5   :  { %v496_v61 = vmax.f32 %v436_v57, 0.0 }
 0x1e6   :  { %v512_v62 = vpack.c.bf16 %v498_v59, %v497_v58 }
 0x1e7   :  { %v511_v63 = vpack.c.bf16 %v496_v61, %v495_v60  ;;  %v1590_v0 = vpop.f32.mrb[4].mxu1 }
 0x1e8   :  { %v457_v1 = vadd.f32 %v1590_v0, %v1384_v49  ;;  %v448_v2 = vpop.f32.mrb[5].mxu1 }
 0x1e9   :  { %v449_v4 = vadd.f32 %v1384_v49, %v448_v2  ;;  %v1591_v6 = vpop.f32.mrb[6].mxu1  ;;  %1616 = vmatprep.mubr.bf16.mxu0 %v511_v63 }
 0x1ea   :  { %v460_v7 = vadd.f32 %v1591_v6, %v1384_v49  ;;  %v451_v9 = vpop.f32.mrb[7].mxu1  ;;  %1617 = vmatmul.mubr.bf16.vlgmr.msra.gmra.mrb[16].mxu0 %v512_v62  ;;  %v501_v13 = vmax.f32 %v457_v1, 0.0 }
 0x1eb   :  { %v452_v11 = vadd.f32 %v1384_v49, %v451_v9  ;;  %v499_v22 = vmax.f32 %v449_v4, 0.0 }
 0x1ec   :  { %v502_v14 = vmax.f32 %v460_v7, 0.0 }
 0x1ed   :  { %v500_v23 = vmax.f32 %v452_v11, 0.0 }
 0x1ee   :  { %v514_v24 = vpack.c.bf16 %v502_v14, %v501_v13 }
 0x1ef   :  { %v513_v8 = vpack.c.bf16 %v500_v23, %v499_v22  ;;  %v1594_v25 = vpop.f32.mrb[8].mxu1 }
 0x1f0   :  { %v473_v26 = vadd.f32 %v1594_v25, %v1384_v49  ;;  %v464_v27 = vpop.f32.mrb[9].mxu1 }
 0x1f1   :  { %v465_v5 = vadd.f32 %v1384_v49, %v464_v27  ;;  %v1595_v28 = vpop.f32.mrb[10].mxu1  ;;  %1620 = vmatprep.mubr.bf16.mxu0 %v513_v8 }
 0x1f2   :  { %v476_v29 = vadd.f32 %v1595_v28, %v1384_v49  ;;  %v467_v30 = vpop.f32.mrb[11].mxu1  ;;  %1621 = vmatmul.mubr.bf16.gmra.mrb[20].mxu0 %v514_v24  ;;  %v505_v33 = vmax.f32 %v473_v26, 0.0 }
 0x1f3   :  { %v468_v31 = vadd.f32 %v1384_v49, %v467_v30  ;;  %v503_v35 = vmax.f32 %v465_v5, 0.0 }
 0x1f4   :  { %v506_v34 = vmax.f32 %v476_v29, 0.0 }
 0x1f5   :  { %v504_v36 = vmax.f32 %v468_v31, 0.0 }
 0x1f6   :  { %v516_v37 = vpack.c.bf16 %v506_v34, %v505_v33 }
 0x1f7   :  { %v515_v38 = vpack.c.bf16 %v504_v36, %v503_v35  ;;  %v1598_v39 = vpop.f32.mrb[12].mxu1 }
 0x1f8   :  { %v489_v40 = vadd.f32 %v1598_v39, %v1384_v49  ;;  %v480_v41 = vpop.f32.mrb[13].mxu1 }
 0x1f9   :  { %v481_v12 = vadd.f32 %v1384_v49, %v480_v41  ;;  %v1599_v42 = vpop.f32.mrb[14].mxu1  ;;  %1624 = vmatprep.mubr.bf16.mxu0 %v515_v38 }
 0x1fa   :  { %v492_v43 = vadd.f32 %v1599_v42, %v1384_v49  ;;  %v483_v44 = vpop.f32.mrb[15].mxu1  ;;  %1625 = vmatmul.mubr.bf16.gmra.mrb[24].mxu0 %v516_v37  ;;  %v509_v10 = vmax.f32 %v489_v40, 0.0 }
 0x1fb   :  { %v484_v45 = vadd.f32 %v1384_v49, %v483_v44  ;;  %v507_v47 = vmax.f32 %v481_v12, 0.0  ;;  %v2114_v49 = vld [vmem:[%s2424_s7] ss:$0 sm:$0xff] }
 0x1fc   :  { %v510_v46 = vmax.f32 %v492_v43, 0.0 }
 0x1fd   :  { %v508_v48 = vmax.f32 %v484_v45, 0.0 }
 0x1fe   :  { %v518_v32 = vpack.c.bf16 %v510_v46, %v509_v10 }
 0x1ff   :  { %v517_v50 = vpack.c.bf16 %v508_v48, %v507_v47 }
 0x201   :  { %1628 = vmatprep.mubr.bf16.mxu0 %v517_v50 }
 0x202   :  { %1629 = vmatmul.mubr.bf16.gmra.mrb[28].mxu0 %v518_v32 }
 0x203   :  { %1668 = vmatprep.mubr.bf16.mxu0 %v1937_v3 }
 0x2bd   :  { %v1618_v52 = vpop.f32.mrb[16].mxu0 }
 0x2be   :  { %v633_v53 = vadd.f32 %v1618_v52, %v2114_v49  ;;  %v624_v54 = vpop.f32.mrb[17].mxu0  ;;  %v1804_v52 = vld [vmem:[%s2425_s8] sm:$0xff]  }
 0x2bf   :  { %v625_v55 = vadd.f32 %v2114_v49, %v624_v54  ;;  %v1619_v56 = vpop.f32.mrb[18].mxu0  ;;  %v1805_v54 = vld [vmem:[%s2425_s8 + $0x8] sm:$0xff]  }
 0x2c0   :  { %v689_v3 = vmax.f32 %v633_v53, 0.0  ;;  %v636_v57 = vadd.f32 %v1619_v56, %v2114_v49  ;;  %v627_v58 = vpop.f32.mrb[19].mxu0  ;;  %v2231_v53 = vld [vmem:[%s2419_s2] sm:$0xff]   ;;  %v1807_v56 = vld [vmem:[%s2425_s8 + $0x18] sm:$0xff]  }
 0x2c1   :  { %v687_v59 = vmax.f32 %v625_v55, 0.0  ;;  %v628_v60 = vadd.f32 %v2114_v49, %v627_v58  ;;  %v1806_v55 = vld [vmem:[%s2425_s8 + $0x10] sm:$0xff]   ;;  %v1817_v58 = vld [vmem:[%s2427_s10 + $0x28] sm:$0xff]  }
 0x2c2   :  { %705 = vst [vmem:[%s2429_s12 + $0x20] sm:$0xff] %v689_v3  ;;  %v690_v61 = vmax.f32 %v636_v57, 0.0  ;;  %v1816_v57 = vld [vmem:[%s2427_s10 + $0x20] sm:$0xff]  }
 0x2c3   :  { %703 = vst [vmem:[%s2429_s12] sm:$0xff] %v687_v59  ;;  %v688_v62 = vmax.f32 %v628_v60, 0.0  ;;  %v2284_v60 = vstv %s777_s14 }
 0x2c4   :  { %706 = vst [vmem:[%s2429_s12 + $0x30] sm:$0xff] %v690_v61  ;;  %v2129_v63 = vpack.c.bf16 %v690_v61, %v689_v3  ;;  %v1815_v3 = vld [vmem:[%s2427_s10 + $0x18] sm:$0xff]  }
 0x2c5   :  { %704 = vst [vmem:[%s2429_s12 + $0x10] sm:$0xff] %v688_v62  ;;  %v2134_v0 = vpack.c.bf16 %v688_v62, %v687_v59  ;;  %v1622_v1 = vpop.f32.mrb[20].mxu0 }
 0x2c6   :  { %v649_v2 = vadd.f32 %v1622_v1, %v2114_v49  ;;  %v640_v4 = vpop.f32.mrb[21].mxu0  ;;  %v780_v59 = vunpack.c.l.bf16 %v2129_v63  ;;  %v781_v62 = vunpack.c.h.bf16 %v2129_v63 }
 0x2c7   :  { %v641_v6 = vadd.f32 %v2114_v49, %v640_v4  ;;  %v1623_v7 = vpop.f32.mrb[22].mxu0  ;;  %1633 = vmatpush3.bf16.msra.mxu1 %v2134_v0  ;;  %1652 = vmatprep.subr.bf16.mxu0 %v2134_v0  ;;  %v778_v61 = vunpack.c.l.bf16 %v2134_v0  ;;  %v779_v1 = vunpack.c.h.bf16 %v2134_v0 }
 0x2c8   :  { %v693_v9 = vmax.f32 %v649_v2, 0.0  ;;  %v652_v11 = vadd.f32 %v1623_v7, %v2114_v49  ;;  %v643_v13 = vpop.f32.mrb[23].mxu0  ;;  %1653 = vmatpush3.bf16.msra.mxu0 %v2134_v0  ;;  %1634 = vmatprep.subr.bf16.mxu1 %v1843_v51  ;;  %v797_v2 = vmul.f32 %v2284_v60, %v780_v59 }
 0x2c9   :  { %v691_v14 = vmax.f32 %v641_v6, 0.0  ;;  %v644_v22 = vadd.f32 %v2114_v49, %v643_v13  ;;  %1654 = vmatprep.subr.bf16.mxu0 %v2129_v63  ;;  %v795_v7 = vmul.f32 %v2284_v60, %v778_v61  ;;  %v796_v0 = vmul.f32 %v2284_v60, %v779_v1 }
 0x2ca   :  { %709 = vst [vmem:[%s2429_s12 + $0x60] sm:$0xff] %v693_v9  ;;  %v694_v23 = vmax.f32 %v652_v11, 0.0 }
 0x2cb   :  { %707 = vst [vmem:[%s2429_s12 + $0x40] sm:$0xff] %v691_v14  ;;  %v692_v24 = vmax.f32 %v644_v22, 0.0  ;;  %1635 = vmatpush3.bf16.msra.mxu1 %v2129_v63 }
 0x2cc   :  { %710 = vst [vmem:[%s2429_s12 + $0x70] sm:$0xff] %v694_v23  ;;  %v2155_v8 = vpack.c.bf16 %v694_v23, %v693_v9  ;;  %1655 = vmatpush3.bf16.msra.mxu0 %v2129_v63  ;;  %1636 = vmatprep.subr.bf16.mxu1 %v1843_v51 }
 0x2cd   :  { %708 = vst [vmem:[%s2429_s12 + $0x50] sm:$0xff] %v692_v24  ;;  %v2162_v25 = vpack.c.bf16 %v692_v24, %v691_v14  ;;  %v1626_v26 = vpop.f32.mrb[24].mxu0  ;;  %v798_v14 = vmul.f32 %v2284_v60, %v781_v62 }
 0x2ce   :  { %v665_v27 = vadd.f32 %v1626_v26, %v2114_v49  ;;  %v656_v5 = vpop.f32.mrb[25].mxu0 }
 0x2cf   :  { %v657_v28 = vadd.f32 %v2114_v49, %v656_v5  ;;  %v1627_v29 = vpop.f32.mrb[26].mxu0  ;;  %1637 = vmatpush3.bf16.msra.mxu1 %v2162_v25  ;;  %1656 = vmatprep.subr.bf16.mxu0 %v2162_v25  ;;  %v784_v5 = vunpack.c.l.bf16 %v2155_v8 }
 0x2d0   :  { %v697_v30 = vmax.f32 %v665_v27, 0.0  ;;  %v668_v31 = vadd.f32 %v1627_v29, %v2114_v49  ;;  %v659_v33 = vpop.f32.mrb[27].mxu0  ;;  %1657 = vmatpush3.bf16.msra.mxu0 %v2162_v25  ;;  %1638 = vmatprep.subr.bf16.mxu1 %v1843_v51  ;;  %v782_v29 = vunpack.c.l.bf16 %v2162_v25 }
 0x2d1   :  { %v695_v34 = vmax.f32 %v657_v28, 0.0  ;;  %v660_v35 = vadd.f32 %v2114_v49, %v659_v33  ;;  %1658 = vmatprep.subr.bf16.mxu0 %v2155_v8 }
 0x2d2   :  { %713 = vst [vmem:[%s2429_s12 + $0xa0] sm:$0xff] %v697_v30  ;;  %v698_v36 = vmax.f32 %v668_v31, 0.0  ;;  %v785_v31 = vunpack.c.h.bf16 %v2155_v8 }
 0x2d3   :  { %711 = vst [vmem:[%s2429_s12 + $0x80] sm:$0xff] %v695_v34  ;;  %v696_v37 = vmax.f32 %v660_v35, 0.0  ;;  %1639 = vmatpush3.bf16.msra.mxu1 %v2155_v8  ;;  %v801_v35 = vmul.f32 %v2284_v60, %v784_v5 }
 0x2d4   :  { %714 = vst [vmem:[%s2429_s12 + $0xb0] sm:$0xff] %v698_v36  ;;  %v2183_v38 = vpack.c.bf16 %v698_v36, %v697_v30  ;;  %1659 = vmatpush3.bf16.msra.mxu0 %v2155_v8  ;;  %1640 = vmatprep.subr.bf16.mxu1 %v1843_v51 }
 0x2d5   :  { %712 = vst [vmem:[%s2429_s12 + $0x90] sm:$0xff] %v696_v37  ;;  %v2190_v39 = vpack.c.bf16 %v696_v37, %v695_v34  ;;  %v1630_v40 = vpop.f32.mrb[28].mxu0  ;;  %v783_v34 = vunpack.c.h.bf16 %v2162_v25  ;;  %v799_v37 = vmul.f32 %v2284_v60, %v782_v29 }
 0x2d6   :  { %v681_v41 = vadd.f32 %v1630_v40, %v2114_v49  ;;  %v672_v12 = vpop.f32.mrb[29].mxu0 }
 0x2d7   :  { %v673_v42 = vadd.f32 %v2114_v49, %v672_v12  ;;  %v1631_v43 = vpop.f32.mrb[30].mxu0  ;;  %1641 = vmatpush3.bf16.msra.mxu1 %v2190_v39  ;;  %1660 = vmatprep.subr.bf16.mxu0 %v2190_v39  ;;  %v802_v12 = vmul.f32 %v2284_v60, %v785_v31 }
 0x2d8   :  { %v701_v44 = vmax.f32 %v681_v41, 0.0  ;;  %v684_v45 = vadd.f32 %v1631_v43, %v2114_v49  ;;  %v675_v10 = vpop.f32.mrb[31].mxu0  ;;  %1661 = vmatpush3.bf16.msra.mxu0 %v2190_v39  ;;  %1642 = vmatprep.subr.bf16.mxu1 %v1843_v51 }
 0x2d9   :  { %v699_v46 = vmax.f32 %v673_v42, 0.0  ;;  %v676_v47 = vadd.f32 %v2114_v49, %v675_v10  ;;  %1662 = vmatprep.subr.bf16.mxu0 %v2183_v38  ;;  %v788_v10 = vunpack.c.l.bf16 %v2183_v38 }
 0x2da   :  { %717 = vst [vmem:[%s2429_s12 + $0xe0] sm:$0xff] %v701_v44  ;;  %v702_v48 = vmax.f32 %v684_v45, 0.0 }
 0x2db   :  { %715 = vst [vmem:[%s2429_s12 + $0xc0] sm:$0xff] %v699_v46  ;;  %v700_v32 = vmax.f32 %v676_v47, 0.0  ;;  %1643 = vmatpush3.bf16.msra.mxu1 %v2183_v38 }
 0x2dc   :  { %718 = vst [vmem:[%s2429_s12 + $0xf0] sm:$0xff] %v702_v48  ;;  %v2211_v50 = vpack.c.bf16 %v702_v48, %v701_v44  ;;  %1663 = vmatpush3.bf16.msra.mxu0 %v2183_v38  ;;  %1644 = vmatprep.subr.bf16.mxu1 %v1843_v51  ;;  %v800_v44 = vmul.f32 %v2284_v60, %v783_v34  ;;  %v789_v48 = vunpack.c.h.bf16 %v2183_v38 }
 0x2dd   :  { %716 = vst [vmem:[%s2429_s12 + $0xd0] sm:$0xff] %v700_v32  ;;  %v2218_v49 = vpack.c.bf16 %v700_v32, %v699_v46  ;;  %v786_v46 = vunpack.c.l.bf16 %v2190_v39 }
 0x2de   :  { %v793_v59 = vunpack.c.h.bf16 %v2211_v50 }
 0x2df   :  { %1645 = vmatpush3.bf16.msra.mxu1 %v2218_v49  ;;  %1664 = vmatprep.subr.bf16.mxu0 %v2218_v49  ;;  %v791_v62 = vunpack.c.h.bf16 %v2218_v49 }
 0x2e0   :  { %1665 = vmatpush3.bf16.msra.mxu0 %v2218_v49  ;;  %1646 = vmatprep.subr.bf16.mxu1 %v1843_v51 }
 0x2e1   :  { %1666 = vmatprep.subr.bf16.mxu0 %v2211_v50 }
 0x2e3   :  { %1647 = vmatpush3.bf16.msra.mxu1 %v2211_v50 }
 0x2e4   :  { %1667 = vmatpush3.bf16.msra.mxu0 %v2211_v50  ;;  %1684 = vmatprep.subr.bf16.mxu1 %v1804_v52 }
 0x2e6   :  { %1649 = vmatmul.mubr.bf16.vlgmr.msra.gmra.mrb[16].mxu1 %v2231_v53 }
 0x2e7   :  { %1669 = vmatmul.mubr.bf16.vlgmr.msra.gmra.mrb[32].mxu0 %v2000_v15  ;;  %1685 = vmatpush3.bf16.msra.mxu1 %v1804_v52  ;;  %v1808_v15 = vld [vmem:[%s2425_s8 + $0x20] sm:$0xff]   ;;  %v787_v52 = vunpack.c.h.bf16 %v2190_v39 }
 0x2e8   :  { %1672 = vmatprep.mubr.bf16.mxu0 %v2005_v16  ;;  %1686 = vmatprep.subr.bf16.mxu1 %v1805_v54  ;;  %v1809_v16 = vld [vmem:[%s2425_s8 + $0x28] sm:$0xff]  }
 0x2eb   :  { %1687 = vmatpush3.bf16.msra.mxu1 %v1805_v54  ;;  %v805_v54 = vmul.f32 %v2284_v60, %v788_v10 }
 0x2ec   :  { %1688 = vmatprep.subr.bf16.mxu1 %v1806_v55 }
 0x2ef   :  { %1673 = vmatmul.mubr.bf16.gmra.mrb[36].mxu0 %v2013_v17  ;;  %1689 = vmatpush3.bf16.msra.mxu1 %v1806_v55  ;;  %v1810_v17 = vld [vmem:[%s2425_s8 + $0x30] sm:$0xff]  }
 0x2f0   :  { %1676 = vmatprep.mubr.bf16.mxu0 %v2018_v18  ;;  %1690 = vmatprep.subr.bf16.mxu1 %v1807_v56  ;;  %v1811_v18 = vld [vmem:[%s2425_s8 + $0x38] sm:$0xff]  }
 0x2f3   :  { %1691 = vmatpush3.bf16.msra.mxu1 %v1807_v56  ;;  %v803_v56 = vmul.f32 %v2284_v60, %v786_v46 }
 0x2f4   :  { %1692 = vmatprep.subr.bf16.mxu1 %v1808_v15 }
 0x2f7   :  { %1677 = vmatmul.mubr.bf16.gmra.mrb[40].mxu0 %v2025_v19  ;;  %1693 = vmatpush3.bf16.msra.mxu1 %v1808_v15  ;;  %v1812_v19 = vld [vmem:[%s2427_s10] sm:$0xff]  }
 0x2f8   :  { %1680 = vmatprep.mubr.bf16.mxu0 %v2030_v20  ;;  %1694 = vmatprep.subr.bf16.mxu1 %v1809_v16  ;;  %v1813_v20 = vld [vmem:[%s2427_s10 + $0x8] sm:$0xff]  }
 0x2f9   :  { %1716 = vmatprep.subr.bf16.mxu0 %v1812_v19 }
 0x2fa   :  { %1717 = vmatpush3.bf16.msra.mxu0 %v1812_v19 }
 0x2fb   :  { %1695 = vmatpush3.bf16.msra.mxu1 %v1809_v16  ;;  %1718 = vmatprep.subr.bf16.mxu0 %v1813_v20 }
 0x2fc   :  { %1696 = vmatprep.subr.bf16.mxu1 %v1810_v17 }
 0x2fe   :  { %1719 = vmatpush3.bf16.msra.mxu0 %v1813_v20  ;;  %v804_v20 = vmul.f32 %v2284_v60, %v787_v52 }
 0x2ff   :  { %1681 = vmatmul.mubr.bf16.gmra.mrb[44].mxu0 %v2037_v21  ;;  %1697 = vmatpush3.bf16.msra.mxu1 %v1810_v17  ;;  %v1814_v21 = vld [vmem:[%s2427_s10 + $0x10] sm:$0xff]   ;;  %v806_v17 = vmul.f32 %v2284_v60, %v789_v48 }
 0x300   :  { %1698 = vmatprep.subr.bf16.mxu1 %v1811_v18  ;;  %1720 = vmatprep.subr.bf16.mxu0 %v1814_v21 }
 0x302   :  { %1721 = vmatpush3.bf16.msra.mxu0 %v1814_v21 }
 0x303   :  { %1699 = vmatpush3.bf16.msra.mxu1 %v1811_v18  ;;  %1722 = vmatprep.subr.bf16.mxu0 %v1815_v3 }
 0x304   :  { %1748 = vmatprep.subr.bf16.mxu1 %v1843_v51 }
 0x306   :  { %1723 = vmatpush3.bf16.msra.mxu0 %v1815_v3  ;;  %v792_v3 = vunpack.c.l.bf16 %v2211_v50 }
 0x307   :  { %1724 = vmatprep.subr.bf16.mxu0 %v1816_v57 }
 0x308   :  { %v809_v1 = vmul.f32 %v2284_v60, %v792_v3 }
 0x30a   :  { %1725 = vmatpush3.bf16.msra.mxu0 %v1816_v57  ;;  %v790_v57 = vunpack.c.l.bf16 %v2218_v49 }
 0x30b   :  { %1726 = vmatprep.subr.bf16.mxu0 %v1817_v58 }
 0x30e   :  { %1727 = vmatpush3.bf16.msra.mxu0 %v1817_v58 }
 0x3b9   :  { %v767_v4 = vpop.f32.mrb[16].mxu1 }
 0x3ba   :  { %v1670_v6 = vpop.f32.mrb[32].mxu0  ;;  %774 = vst [vmem:[%s2430_s13] sm:$0xff] %v767_v4  ;;  %v1650_v9 = vpop.f32.mrb[17].mxu1  ;;  %v807_v4 = vmul.f32 %v2284_v60, %v790_v57 }
 0x3bb   :  { %v854_v11 = vadd.f32 %v1670_v6, %v797_v2  ;;  %v845_v13 = vpop.f32.mrb[33].mxu0  ;;  %v770_v22 = vpop.f32.mrb[18].mxu1  ;;  %v810_v9 = vmul.f32 %v2284_v60, %v793_v59 }
 0x3bc   :  { %v846_v23 = vadd.f32 %v845_v13, %v795_v7  ;;  %v1671_v63 = vpop.f32.mrb[34].mxu0  ;;  %775 = vst [vmem:[%s2430_s13 + $0x10] sm:$0xff] %v770_v22  ;;  %v1651_v24 = vpop.f32.mrb[19].mxu1 }
 0x3bd   :  { %v857_v26 = vadd.f32 %v1671_v63, %v798_v14  ;;  %v848_v27 = vpop.f32.mrb[35].mxu0  ;;  %v808_v14 = vmul.f32 %v2284_v60, %v791_v62  ;;  %v1819_v60 = vld [vmem:[%s2427_s10 + $0x38] sm:$0xff]   ;;  %v1404_v24 = vld [vmem:[%s2426_s9] ss:$0 sm:$0xff] }
 0x3be   :  { %v849_v28 = vadd.f32 %v848_v27, %v796_v0  ;;  %v1818_v0 = vld [vmem:[%s2427_s10 + $0x30] sm:$0xff]  }
 0x3bf   :  { %v909_v30 = vpack.c.bf16 %v857_v26, %v854_v11  ;;  %1728 = vmatprep.subr.bf16.mxu0 %v1818_v0 }
 0x3c0   :  { %v908_v33 = vpack.c.bf16 %v849_v28, %v846_v23  ;;  %1729 = vmatpush3.bf16.msra.mxu0 %v1818_v0 }
 0x3c1   :  { %1730 = vmatprep.subr.bf16.mxu0 %v1819_v60 }
 0x3c2   :  { %v1674_v36 = vpop.f32.mrb[36].mxu0  ;;  %1700 = vmatprep.mubr.bf16.mxu1 %v908_v33 }
 0x3c3   :  { %v870_v40 = vadd.f32 %v1674_v36, %v801_v35  ;;  %v861_v41 = vpop.f32.mrb[37].mxu0  ;;  %1701 = vmatmul.mubr.bf16.vlgmr.msra.gmra.mrb[20].mxu1 %v909_v30 }
 0x3c4   :  { %v862_v42 = vadd.f32 %v861_v41, %v799_v37  ;;  %v1675_v43 = vpop.f32.mrb[38].mxu0  ;;  %1731 = vmatpush3.bf16.msra.mxu0 %v1819_v60 }
 0x3c5   :  { %v873_v45 = vadd.f32 %v1675_v43, %v802_v12  ;;  %v864_v8 = vpop.f32.mrb[39].mxu0 }
 0x3c6   :  { %v865_v25 = vadd.f32 %v864_v8, %v800_v44 }
 0x3c7   :  { %v911_v47 = vpack.c.bf16 %v873_v45, %v870_v40 }
 0x3c8   :  { %v910_v32 = vpack.c.bf16 %v865_v25, %v862_v42 }
 0x3ca   :  { %v1678_v55 = vpop.f32.mrb[40].mxu0  ;;  %1704 = vmatprep.mubr.bf16.mxu1 %v910_v32 }
 0x3cb   :  { %v886_v15 = vadd.f32 %v1678_v55, %v805_v54  ;;  %v877_v16 = vpop.f32.mrb[41].mxu0  ;;  %1705 = vmatmul.mubr.bf16.gmra.mrb[24].mxu1 %v911_v47 }
 0x3cc   :  { %v878_v18 = vadd.f32 %v877_v16, %v803_v56  ;;  %v1679_v19 = vpop.f32.mrb[42].mxu0 }
 0x3cd   :  { %v889_v21 = vadd.f32 %v1679_v19, %v806_v17  ;;  %v880_v38 = vpop.f32.mrb[43].mxu0 }
 0x3ce   :  { %v881_v39 = vadd.f32 %v880_v38, %v804_v20 }
 0x3cf   :  { %v913_v58 = vpack.c.bf16 %v889_v21, %v886_v15 }
 0x3d0   :  { %v912_v61 = vpack.c.bf16 %v881_v39, %v878_v18 }
 0x3d2   :  { %v1682_v2 = vpop.f32.mrb[44].mxu0  ;;  %1708 = vmatprep.mubr.bf16.mxu1 %v912_v61 }
 0x3d3   :  { %v902_v6 = vadd.f32 %v1682_v2, %v809_v1  ;;  %v893_v7 = vpop.f32.mrb[45].mxu0  ;;  %1709 = vmatmul.mubr.bf16.gmra.mrb[28].mxu1 %v913_v58 }
 0x3d4   :  { %v894_v11 = vadd.f32 %v893_v7, %v807_v4  ;;  %v1683_v13 = vpop.f32.mrb[46].mxu0 }
 0x3d5   :  { %v905_v22 = vadd.f32 %v1683_v13, %v810_v9  ;;  %v896_v50 = vpop.f32.mrb[47].mxu0 }
 0x3d6   :  { %v897_v23 = vadd.f32 %v896_v50, %v808_v14 }
 0x3d7   :  { %v915_v63 = vpack.c.bf16 %v905_v22, %v902_v6 }
 0x3d8   :  { %v914_v49 = vpack.c.bf16 %v897_v23, %v894_v11  ;;  %v2337_v23 = vld [vmem:[%s2428_s11] ss:$0 sm:$0xff] }
 0x3da   :  { %1712 = vmatprep.mubr.bf16.mxu1 %v914_v49 }
 0x3db   :  { %1713 = vmatmul.mubr.bf16.gmra.mrb[32].mxu1 %v915_v63 }
 0x3dc   :  { %1764 = vmatprep.mubr.msk.bf16.mxu1 %vm1844_vm0, %v1843_v51 }
 0x496   :  { %v1702_v26 = vpop.f32.mrb[20].mxu1 }
 0x497   :  { %v1030_v27 = vadd.f32 %v1702_v26, %v1404_v24  ;;  %v1021_v5 = vpop.f32.mrb[21].mxu1 }
 0x498   :  { %v1022_v28 = vadd.f32 %v1404_v24, %v1021_v5  ;;  %v1703_v29 = vpop.f32.mrb[22].mxu1 }
 0x499   :  { %v1033_v30 = vadd.f32 %v1703_v29, %v1404_v24  ;;  %v1024_v31 = vpop.f32.mrb[23].mxu1  ;;  %v1086_v34 = vmax.f32 %v1030_v27, 0.0 }
 0x49a   :  { %v1025_v33 = vadd.f32 %v1404_v24, %v1024_v31  ;;  %v1084_v36 = vmax.f32 %v1022_v28, 0.0 }
 0x49b   :  { %v1087_v35 = vmax.f32 %v1033_v30, 0.0 }
 0x49c   :  { %v1085_v37 = vmax.f32 %v1025_v33, 0.0 }
 0x49d   :  { %v1101_v40 = vpack.c.bf16 %v1087_v35, %v1086_v34 }
 0x49e   :  { %v1100_v41 = vpack.c.bf16 %v1085_v37, %v1084_v36  ;;  %v1706_v12 = vpop.f32.mrb[24].mxu1 }
 0x49f   :  { %v1046_v42 = vadd.f32 %v1706_v12, %v1404_v24  ;;  %v1037_v43 = vpop.f32.mrb[25].mxu1 }
 0x4a0   :  { %v1038_v44 = vadd.f32 %v1404_v24, %v1037_v43  ;;  %v1707_v45 = vpop.f32.mrb[26].mxu1  ;;  %1732 = vmatprep.mubr.bf16.mxu0 %v1100_v41 }
 0x4a1   :  { %v1049_v8 = vadd.f32 %v1707_v45, %v1404_v24  ;;  %v1040_v10 = vpop.f32.mrb[27].mxu1  ;;  %1733 = vmatmul.mubr.bf16.vlgmr.msra.gmra.mrb[48].mxu0 %v1101_v40  ;;  %v1090_v46 = vmax.f32 %v1046_v42, 0.0 }
 0x4a2   :  { %v1041_v25 = vadd.f32 %v1404_v24, %v1040_v10  ;;  %v1088_v48 = vmax.f32 %v1038_v44, 0.0 }
 0x4a3   :  { %v1091_v47 = vmax.f32 %v1049_v8, 0.0 }
 0x4a4   :  { %v1089_v32 = vmax.f32 %v1041_v25, 0.0 }
 0x4a5   :  { %v1103_v52 = vpack.c.bf16 %v1091_v47, %v1090_v46 }
 0x4a6   :  { %v1102_v54 = vpack.c.bf16 %v1089_v32, %v1088_v48  ;;  %v1710_v55 = vpop.f32.mrb[28].mxu1 }
 0x4a7   :  { %v1062_v56 = vadd.f32 %v1710_v55, %v1404_v24  ;;  %v1053_v15 = vpop.f32.mrb[29].mxu1 }
 0x4a8   :  { %v1054_v16 = vadd.f32 %v1404_v24, %v1053_v15  ;;  %v1711_v17 = vpop.f32.mrb[30].mxu1  ;;  %1736 = vmatprep.mubr.bf16.mxu0 %v1102_v54 }
 0x4a9   :  { %v1065_v18 = vadd.f32 %v1711_v17, %v1404_v24  ;;  %v1056_v19 = vpop.f32.mrb[31].mxu1  ;;  %1737 = vmatmul.mubr.bf16.gmra.mrb[52].mxu0 %v1103_v52  ;;  %v1094_v21 = vmax.f32 %v1062_v56, 0.0 }
 0x4aa   :  { %v1057_v20 = vadd.f32 %v1404_v24, %v1056_v19  ;;  %v1092_v3 = vmax.f32 %v1054_v16, 0.0 }
 0x4ab   :  { %v1095_v38 = vmax.f32 %v1065_v18, 0.0 }
 0x4ac   :  { %v1093_v39 = vmax.f32 %v1057_v20, 0.0 }
 0x4ad   :  { %v1105_v57 = vpack.c.bf16 %v1095_v38, %v1094_v21 }
 0x4ae   :  { %v1104_v58 = vpack.c.bf16 %v1093_v39, %v1092_v3  ;;  %v1714_v59 = vpop.f32.mrb[32].mxu1 }
 0x4af   :  { %v1078_v61 = vadd.f32 %v1714_v59, %v1404_v24  ;;  %v1069_v62 = vpop.f32.mrb[33].mxu1 }
 0x4b0   :  { %v1070_v1 = vadd.f32 %v1404_v24, %v1069_v62  ;;  %v1715_v2 = vpop.f32.mrb[34].mxu1  ;;  %1740 = vmatprep.mubr.bf16.mxu0 %v1104_v58 }
 0x4b1   :  { %v1081_v4 = vadd.f32 %v1715_v2, %v1404_v24  ;;  %v1072_v6 = vpop.f32.mrb[35].mxu1  ;;  %1741 = vmatmul.mubr.bf16.gmra.mrb[56].mxu0 %v1105_v57  ;;  %v1098_v9 = vmax.f32 %v1078_v61, 0.0 }
 0x4b2   :  { %v1073_v7 = vadd.f32 %v1404_v24, %v1072_v6  ;;  %v1096_v13 = vmax.f32 %v1070_v1, 0.0 }
 0x4b3   :  { %v1099_v11 = vmax.f32 %v1081_v4, 0.0 }
 0x4b4   :  { %v1097_v14 = vmax.f32 %v1073_v7, 0.0 }
 0x4b5   :  { %v1107_v22 = vpack.c.bf16 %v1099_v11, %v1098_v9 }
 0x4b6   :  { %v1106_v50 = vpack.c.bf16 %v1097_v14, %v1096_v13 }
 0x4b8   :  { %1744 = vmatprep.mubr.bf16.mxu0 %v1106_v50 }
 0x4b9   :  { %1745 = vmatmul.mubr.bf16.gmra.mrb[60].mxu0 %v1107_v22 }
 0x574   :  { %v1734_v63 = vpop.f32.mrb[48].mxu0 }
 0x575   :  { %v1222_v49 = vadd.f32 %v1734_v63, %v2337_v23  ;;  %v1213_v0 = vpop.f32.mrb[49].mxu0 }
 0x576   :  { %v1214_v60 = vadd.f32 %v2337_v23, %v1213_v0  ;;  %v1735_v24 = vpop.f32.mrb[50].mxu0 }
 0x577   :  { %v1278_v26 = vmax.f32 %v1222_v49, 0.0  ;;  %v1225_v27 = vadd.f32 %v1735_v24, %v2337_v23  ;;  %v1216_v5 = vpop.f32.mrb[51].mxu0 }
 0x578   :  { %v1276_v28 = vmax.f32 %v1214_v60, 0.0  ;;  %v1217_v29 = vadd.f32 %v2337_v23, %v1216_v5 }
 0x579   :  { %1294 = vst [vmem:[%s2429_s12 + $0x28] sm:$0xff] %v1278_v26  ;;  %v1279_v30 = vmax.f32 %v1225_v27, 0.0 }
 0x57a   :  { %1292 = vst [vmem:[%s2429_s12 + $0x8] sm:$0xff] %v1276_v28  ;;  %v1277_v31 = vmax.f32 %v1217_v29, 0.0 }
 0x57b   :  { %1295 = vst [vmem:[%s2429_s12 + $0x38] sm:$0xff] %v1279_v30  ;;  %v1309_v33 = vpack.c.bf16 %v1279_v30, %v1278_v26 }
 0x57c   :  { %1293 = vst [vmem:[%s2429_s12 + $0x18] sm:$0xff] %v1277_v31  ;;  %v1308_v34 = vpack.c.bf16 %v1277_v31, %v1276_v28  ;;  %v1738_v35 = vpop.f32.mrb[52].mxu0 }
 0x57d   :  { %v1238_v36 = vadd.f32 %v1738_v35, %v2337_v23  ;;  %v1229_v37 = vpop.f32.mrb[53].mxu0 }
 0x57e   :  { %v1230_v40 = vadd.f32 %v2337_v23, %v1229_v37  ;;  %v1739_v41 = vpop.f32.mrb[54].mxu0  ;;  %1749 = vmatpush3.bf16.msra.mxu1 %v1308_v34 }
 0x57f   :  { %v1282_v12 = vmax.f32 %v1238_v36, 0.0  ;;  %v1241_v42 = vadd.f32 %v1739_v41, %v2337_v23  ;;  %v1232_v43 = vpop.f32.mrb[55].mxu0  ;;  %1750 = vmatprep.subr.bf16.mxu1 %v1843_v51 }
 0x580   :  { %v1280_v44 = vmax.f32 %v1230_v40, 0.0  ;;  %v1233_v45 = vadd.f32 %v2337_v23, %v1232_v43 }
 0x581   :  { %1298 = vst [vmem:[%s2429_s12 + $0x68] sm:$0xff] %v1282_v12  ;;  %v1283_v8 = vmax.f32 %v1241_v42, 0.0 }
 0x582   :  { %1296 = vst [vmem:[%s2429_s12 + $0x48] sm:$0xff] %v1280_v44  ;;  %v1281_v10 = vmax.f32 %v1233_v45, 0.0  ;;  %1751 = vmatpush3.bf16.msra.mxu1 %v1309_v33 }
 0x583   :  { %1299 = vst [vmem:[%s2429_s12 + $0x78] sm:$0xff] %v1283_v8  ;;  %v1311_v25 = vpack.c.bf16 %v1283_v8, %v1282_v12  ;;  %1752 = vmatprep.subr.bf16.mxu1 %v1843_v51 }
 0x584   :  { %1297 = vst [vmem:[%s2429_s12 + $0x58] sm:$0xff] %v1281_v10  ;;  %v1310_v46 = vpack.c.bf16 %v1281_v10, %v1280_v44  ;;  %v1742_v47 = vpop.f32.mrb[56].mxu0 }
 0x585   :  { %v1254_v48 = vadd.f32 %v1742_v47, %v2337_v23  ;;  %v1245_v32 = vpop.f32.mrb[57].mxu0 }
 0x586   :  { %v1246_v52 = vadd.f32 %v2337_v23, %v1245_v32  ;;  %v1743_v54 = vpop.f32.mrb[58].mxu0  ;;  %1753 = vmatpush3.bf16.msra.mxu1 %v1310_v46 }
 0x587   :  { %v1286_v55 = vmax.f32 %v1254_v48, 0.0  ;;  %v1257_v56 = vadd.f32 %v1743_v54, %v2337_v23  ;;  %v1248_v15 = vpop.f32.mrb[59].mxu0  ;;  %1754 = vmatprep.subr.bf16.mxu1 %v1843_v51 }
 0x588   :  { %v1284_v16 = vmax.f32 %v1246_v52, 0.0  ;;  %v1249_v17 = vadd.f32 %v2337_v23, %v1248_v15 }
 0x589   :  { %1302 = vst [vmem:[%s2429_s12 + $0xa8] sm:$0xff] %v1286_v55  ;;  %v1287_v18 = vmax.f32 %v1257_v56, 0.0 }
 0x58a   :  { %1300 = vst [vmem:[%s2429_s12 + $0x88] sm:$0xff] %v1284_v16  ;;  %v1285_v19 = vmax.f32 %v1249_v17, 0.0  ;;  %1755 = vmatpush3.bf16.msra.mxu1 %v1311_v25 }
 0x58b   :  { %1303 = vst [vmem:[%s2429_s12 + $0xb8] sm:$0xff] %v1287_v18  ;;  %v1313_v20 = vpack.c.bf16 %v1287_v18, %v1286_v55  ;;  %1756 = vmatprep.subr.bf16.mxu1 %v1843_v51 }
 0x58c   :  { %1301 = vst [vmem:[%s2429_s12 + $0x98] sm:$0xff] %v1285_v19  ;;  %v1312_v21 = vpack.c.bf16 %v1285_v19, %v1284_v16  ;;  %v1746_v38 = vpop.f32.mrb[60].mxu0 }
 0x58d   :  { %v1270_v3 = vadd.f32 %v1746_v38, %v2337_v23  ;;  %v1261_v39 = vpop.f32.mrb[61].mxu0 }
 0x58e   :  { %v1262_v57 = vadd.f32 %v2337_v23, %v1261_v39  ;;  %v1747_v58 = vpop.f32.mrb[62].mxu0  ;;  %1757 = vmatpush3.bf16.msra.mxu1 %v1312_v21 }
 0x58f   :  { %v1290_v59 = vmax.f32 %v1270_v3, 0.0  ;;  %v1273_v61 = vadd.f32 %v1747_v58, %v2337_v23  ;;  %v1264_v62 = vpop.f32.mrb[63].mxu0  ;;  %1758 = vmatprep.subr.bf16.mxu1 %v1843_v51 }
 0x590   :  { %v1288_v1 = vmax.f32 %v1262_v57, 0.0  ;;  %v1265_v2 = vadd.f32 %v2337_v23, %v1264_v62 }
 0x591   :  { %1306 = vst [vmem:[%s2429_s12 + $0xe8] sm:$0xff] %v1290_v59  ;;  %v1291_v4 = vmax.f32 %v1273_v61, 0.0 }
 0x592   :  { %1304 = vst [vmem:[%s2429_s12 + $0xc8] sm:$0xff] %v1288_v1  ;;  %v1289_v6 = vmax.f32 %v1265_v2, 0.0  ;;  %1759 = vmatpush3.bf16.msra.mxu1 %v1313_v20 }
 0x593   :  { %1307 = vst [vmem:[%s2429_s12 + $0xf8] sm:$0xff] %v1291_v4  ;;  %v1315_v7 = vpack.c.bf16 %v1291_v4, %v1290_v59  ;;  %1760 = vmatprep.subr.bf16.mxu1 %v1843_v51 }
 0x594   :  { %1305 = vst [vmem:[%s2429_s12 + $0xd8] sm:$0xff] %v1289_v6  ;;  %v1314_v9 = vpack.c.bf16 %v1289_v6, %v1288_v1 }
 0x596   :  { %1761 = vmatpush3.bf16.msra.mxu1 %v1314_v9 }
 0x597   :  { %1762 = vmatprep.subr.bf16.mxu1 %v1843_v51 }
 0x59a   :  { %1763 = vmatpush3.bf16.msra.mxu1 %v1315_v7 }
 0x59d   :  { %1765 = vmatmul.mubr.bf16.vlgmr.msra.gmra.mrb[36].mxu1 %v2231_v53 }
 0x670   :  { %v1350_v11 = vpop.f32.mrb[36].mxu1 }
 0x671   :  { %1357 = vst [vmem:[%s2430_s13 + $0x8] sm:$0xff] %v1350_v11  ;;  %v1766_v13 = vpop.f32.mrb[37].mxu1 }
 0x672   :  { %v1353_v14 = vpop.f32.mrb[38].mxu1 }
 0x673   :  { %1358 = vst [vmem:[%s2430_s13 + $0x18] sm:$0xff] %v1353_v14  ;;  %v1767_v22 = vpop.f32.mrb[39].mxu1 }
 0x674   :  { %1367 = vsyncpa [#allocation3], 1 }

</bundles_post_ra>
